<compile_context>
chip_gen: v7x
topology: tpu7x:2x2x1
jax: 0.10.0
libtpu: 0.0.40
codegen_flags: <defaults>
</compile_context>

<pallas_src>
import functools
import math

import jax
import jax.numpy as jnp
from jax.experimental import pallas as pl
from jax.experimental.pallas import tpu as pltpu


def _round_up(x, m):
    return ((x + m - 1) // m) * m


def _svae_fused_kernel(x_ref, w1_ref, b1_ref, w2_ref, b2_ref, w3_ref, b3_ref,
                       wout_ref, bout_ref, out_ref, mulv_ref, *,
                       latent_size, alphabet_len, seq_len):
    """Fused encode -> (mu, logvar) -> decode -> log_softmax over alphabet."""
    f32 = jnp.float32
    bf16 = jnp.bfloat16

    # ---- encode: fc1 + relu (in-kernel bf16 cast, f32 accumulate) ----
    x = x_ref[...].astype(bf16)
    h = jnp.dot(x, w1_ref[...], preferred_element_type=f32) + b1_ref[...]
    h = jnp.maximum(h, 0.0).astype(bf16)

    # ---- merged fc21/fc22: one lane-dense (Hpad, ZPACK) matmul ----
    hz = jnp.dot(h, w2_ref[...], preferred_element_type=f32) + b2_ref[...]  # (TB, ZPACK)
    col = jax.lax.broadcasted_iota(jnp.int32, hz.shape, 1)
    mu_mask = col < latent_size          # cols [0, latent) hold fc21 output
    lv_mask = col == latent_size         # col `latent` holds fc22 output

    # mu = fc21(h) / ||fc21(h)||  (rsqrt on the EUP; eps avoids 0-vector NaN)
    sumsq = jnp.sum(jnp.where(mu_mask, hz * hz, 0.0), axis=-1, keepdims=True)
    mu_vals = hz * jax.lax.rsqrt(sumsq + 1e-12)

    # logvar = softplus(fc22(h)) + 1  (overflow-free softplus form, f32)
    lv_vals = jnp.maximum(hz, 0.0) + jnp.log(1.0 + jnp.exp(-jnp.abs(hz))) + 1.0

    packed = jnp.where(mu_mask, mu_vals, jnp.where(lv_mask, lv_vals, 0.0))
    mulv_ref[...] = packed               # lane-dense (TB, ZPACK): [mu | logvar | 0...]

    # TODO(synk): q_z.rsample() of the von Mises-Fisher distribution uses a
    # data-dependent acceptance-rejection loop + Householder rotation with no
    # clean Pallas equivalent; we use the deterministic vMF mean direction
    # z = mu.  Rows >= latent_size of the padded fc3 weight are zero, so the
    # whole packed vector can be fed through fc3 exactly.
    z = packed.astype(bf16)

    # ---- decode: fc3 + relu, fc_out ----
    h2 = jnp.dot(z, w3_ref[...], preferred_element_type=f32) + b3_ref[...]
    h2 = jnp.maximum(h2, 0.0).astype(bf16)
    y = jnp.dot(h2, wout_ref[...], preferred_element_type=f32) + bout_ref[...]  # (TB, A*S)

    # ---- fused log_softmax over the alphabet axis, flat layout ----
    # flat column a*S + s  <->  (a, s); reduce over a with static lane slices.
    # Per-slice subtract+store: no full-width logz concat, no extra VMEM temp.
    A, S = alphabet_len, seq_len
    slices = [y[:, a * S:(a + 1) * S] for a in range(A)]      # each (TB, S)
    m = slices[0]
    for sl in slices[1:]:
        m = jnp.maximum(m, sl)
    ssum = jnp.exp(slices[0] - m)
    for sl in slices[1:]:
        ssum = ssum + jnp.exp(sl - m)
    logz = m + jnp.log(ssum)                                   # (TB, S)
    for a in range(A):
        out_ref[:, a * S:(a + 1) * S] = (slices[a] - logz).astype(out_ref.dtype)


def init_params(key, input_size, hidden_size, latent_size):
    """Deterministic PyTorch-style Linear init: U(-1/sqrt(fan_in), 1/sqrt(fan_in))."""
    def linear(k, fan_in, fan_out):
        kw, kb = jax.random.split(k)
        bound = 1.0 / math.sqrt(fan_in)
        w = jax.random.uniform(kw, (fan_in, fan_out), jnp.float32, -bound, bound)
        b = jax.random.uniform(kb, (1, fan_out), jnp.float32, -bound, bound)
        return w, b

    k1, k21, k22, k3, kout = jax.random.split(key, 5)
    w1, b1 = linear(k1, input_size, hidden_size)
    w21, b21 = linear(k21, hidden_size, latent_size)
    w22, b22 = linear(k22, hidden_size, 1)
    w3, b3 = linear(k3, latent_size, hidden_size)
    wout, bout = linear(kout, hidden_size, input_size)
    return dict(w1=w1, b1=b1, w21=w21, b21=b21, w22=w22, b22=b22,
                w3=w3, b3=b3, wout=wout, bout=bout)


def prepare_params(params, alphabet_len, seq_len):
    """One-time weight packing (pad + merge + bf16 cast). Call once, reuse."""
    f32, bf16 = jnp.float32, jnp.bfloat16
    input_size = alphabet_len * seq_len
    hidden_size = params["w1"].shape[1]
    latent_size = params["w21"].shape[1]
    zpack = max(128, _round_up(latent_size + 1, 128))   # lane-dense [mu|logvar|0]
    hpad = max(128, _round_up(hidden_size, 128))        # lane-dense hidden width

    def pad_cols(a, n):
        return jnp.pad(a, ((0, 0), (0, n - a.shape[1])))

    def pad_rows(a, n):
        return jnp.pad(a, ((0, n - a.shape[0]), (0, 0)))

    w1 = pad_cols(params["w1"], hpad).astype(bf16)                       # (in, hpad)
    b1 = pad_cols(params["b1"], hpad).astype(f32)                        # (1, hpad)
    # merged + lane-padded fc21 | fc22 -> one (hpad, zpack) matmul
    w2 = pad_rows(pad_cols(jnp.concatenate([params["w21"], params["w22"]], 1),
                           zpack), hpad).astype(bf16)                    # (hpad, zpack)
    b2 = pad_cols(jnp.concatenate([params["b21"], params["b22"]], 1),
                  zpack).astype(f32)                                     # (1, zpack)
    # zero-pad fc3 rows so packed (mu | logvar | 0) can be fed directly (z = mu)
    w3 = pad_cols(pad_rows(params["w3"], zpack), hpad).astype(bf16)      # (zpack, hpad)
    b3 = pad_cols(params["b3"], hpad).astype(f32)                        # (1, hpad)
    wout = pad_rows(params["wout"], hpad).astype(bf16)                   # (hpad, in)
    bout = params["bout"].astype(f32)                                    # (1, in)

    return dict(w1=w1, b1=b1, w2=w2, b2=b2, w3=w3, b3=b3, wout=wout, bout=bout,
                meta=dict(input_size=input_size, hidden_size=hidden_size,
                          latent_size=latent_size, zpack=zpack, hpad=hpad,
                          alphabet_len=alphabet_len, seq_len=seq_len))


def svae_forward(x, packed, out_dtype=jnp.float32):
    """Returns (out_log_softmax, mu, logvar); mu/logvar parameterize q_z, p_z."""
    meta = packed["meta"]
    A, S = meta["alphabet_len"], meta["seq_len"]
    input_size, latent_size = meta["input_size"], meta["latent_size"]
    zpack, hpad = meta["zpack"], meta["hpad"]

    B = x.shape[0]
    x_flat = x.reshape(B, input_size)    # metadata-only; f32 stays f32 in HBM

    w1, b1 = packed["w1"], packed["b1"]
    w2, b2 = packed["w2"], packed["b2"]
    w3, b3 = packed["w3"], packed["b3"]
    wout, bout = packed["wout"], packed["bout"]

    # batch tile: tiny batches in one tile; medium batches split into >=2
    # "parallel" steps so both v7x TensorCores get work; cap at 256 rows.
    if B <= 8:
        tb = B
    elif B <= 256:
        tb = _round_up(pl.cdiv(B, 2), 8)
    else:
        tb = 256
    grid = (pl.cdiv(B, tb),)

    def _row_map(i):
        return (i, 0)

    def _const_map(i):
        return (0, 0)

    kernel = functools.partial(_svae_fused_kernel,
                               latent_size=latent_size,
                               alphabet_len=A, seq_len=S)

    # VMEM ceiling: leave headroom below physical capacity (v7x has 64 MiB).
    try:
        cap = int(pltpu.get_tpu_info().vmem_capacity_bytes)
    except Exception:
        cap = 64 * 1024 * 1024
    ceiling = min(int(cap * 0.8), 100 * 1024 * 1024)

    weights = [(w1, (input_size, hpad)), (b1, (1, hpad)),
               (w2, (hpad, zpack)),      (b2, (1, zpack)),
               (w3, (zpack, hpad)),      (b3, (1, hpad)),
               (wout, (hpad, input_size)), (bout, (1, input_size))]
    out_itemsize = jnp.dtype(out_dtype).itemsize

    def _run(single_buffer_weights):
        def wspec(shape):
            if single_buffer_weights:
                return pl.BlockSpec(shape, _const_map,
                                    pipeline_mode=pl.Buffered(1))
            return pl.BlockSpec(shape, _const_map)

        nbuf = 1 if single_buffer_weights else 2
        w_bytes = nbuf * 2 * (w1.size + w2.size + w3.size + wout.size)      # bf16
        b_bytes = nbuf * 4 * (b1.size + b2.size + b3.size + bout.size)      # f32
        io_bytes = 2 * (tb * input_size * 4                # x tile, double-buffered
                        + tb * input_size * out_itemsize   # recon tile
                        + tb * zpack * 4)                  # mu/logvar tile
        act_bytes = 4 * tb * (input_size + 2 * hpad + 2 * zpack)  # live intermediates
        est = w_bytes + b_bytes + io_bytes + act_bytes
        vmem_limit = min(ceiling, max(32 * 1024 * 1024, int(est * 1.5)))

        return pl.pallas_call(
            kernel,
            out_shape=(jax.ShapeDtypeStruct((B, input_size), out_dtype),
                       jax.ShapeDtypeStruct((B, zpack), jnp.float32)),
            grid_spec=pltpu.PrefetchScalarGridSpec(
                num_scalar_prefetch=0,
                grid=grid,
                in_specs=[pl.BlockSpec((tb, input_size), _row_map)]       # x
                         + [wspec(shape) for _, shape in weights],        # weights
                out_specs=(
                    pl.BlockSpec((tb, input_size), _row_map),   # log-softmax recon
                    pl.BlockSpec((tb, zpack), _row_map),        # packed [mu|logvar|0]
                ),
            ),
            compiler_params=pltpu.CompilerParams(
                dimension_semantics=("parallel",),
                vmem_limit_bytes=vmem_limit,
            ),
        )(x_flat, *[a for a, _ in weights])

    try:
        out_flat, packed_out = _run(True)
    except Exception:
        # pl.Buffered(1) pipeline_mode rejected on this jax build: fall back to
        # default (double-buffered) weight residency — correct, just more VMEM.
        out_flat, packed_out = _run(False)

    # glue: metadata-only reshape / tiny slices (no extra HBM round-trips)
    out = out_flat.reshape(B, A, S)
    mu = packed_out[:, :latent_size]
    logvar = packed_out[:, latent_size:latent_size + 1]
    return out, mu, logvar


if __name__ == "__main__":
    # small shapes consistent with the module
    batch = 2
    alphabet_len = 4
    seq_len = 8
    hidden_size = 32
    latent_size = 2
    input_size = alphabet_len * seq_len

    key = jax.random.PRNGKey(0)
    kx, kp = jax.random.split(key)
    x = jax.random.uniform(kx, (batch, alphabet_len, seq_len), jnp.float32)
    raw_params = init_params(kp, input_size, hidden_size, latent_size)
    packed_params = prepare_params(raw_params, alphabet_len, seq_len)  # one-time

    out, mu, logvar = svae_forward(x, packed_params)
    jax.block_until_ready((out, mu, logvar))

    assert out.shape == (batch, alphabet_len, seq_len)
    assert mu.shape == (batch, latent_size)
    assert logvar.shape == (batch, 1)
    # log_softmax over the alphabet axis: exp must sum to 1 per (b, s)
    probs = jnp.exp(out).sum(axis=1)
    assert bool(jnp.all(jnp.abs(probs - 1.0) < 1e-2))
    # mu rows are L2-normalized
    assert bool(jnp.all(jnp.abs(jnp.sum(mu * mu, axis=-1) - 1.0) < 1e-2))
    print("KERNEL_OK")
</pallas_src>

<mosaic_0001>
module attributes {stable_mosaic.version = 11 : i64} {
  func.func @_svae_fused_kernel(%arg0: i32, %arg1: memref<2x32xf32, #tpu.memory_space<vmem>>, %arg2: memref<32x128xbf16, #tpu.memory_space<vmem>>, %arg3: memref<1x128xf32, #tpu.memory_space<vmem>>, %arg4: memref<128x128xbf16, #tpu.memory_space<vmem>>, %arg5: memref<1x128xf32, #tpu.memory_space<vmem>>, %arg6: memref<128x128xbf16, #tpu.memory_space<vmem>>, %arg7: memref<1x128xf32, #tpu.memory_space<vmem>>, %arg8: memref<128x32xbf16, #tpu.memory_space<vmem>>, %arg9: memref<1x32xf32, #tpu.memory_space<vmem>>, %arg10: memref<2x32xf32, #tpu.memory_space<vmem>>, %arg11: memref<2x128xf32, #tpu.memory_space<vmem>>) attributes {dimension_semantics = [#tpu.dimension_semantics<parallel>], iteration_bounds = array<i64: 1>, scalar_prefetch = 0 : i64, scratch_operands = 0 : i64, tpu.core_type = #tpu.core_type<tc>, window_params = [{transform_indices = @transform_0, window_bounds = array<i64: 2, 32>}, {pipeline_mode = #tpu.pipeline_mode<synchronous>, transform_indices = @transform_1, window_bounds = array<i64: 32, 128>}, {pipeline_mode = #tpu.pipeline_mode<synchronous>, transform_indices = @transform_2, window_bounds = array<i64: 1, 128>}, {pipeline_mode = #tpu.pipeline_mode<synchronous>, transform_indices = @transform_3, window_bounds = array<i64: 128, 128>}, {pipeline_mode = #tpu.pipeline_mode<synchronous>, transform_indices = @transform_4, window_bounds = array<i64: 1, 128>}, {pipeline_mode = #tpu.pipeline_mode<synchronous>, transform_indices = @transform_5, window_bounds = array<i64: 128, 128>}, {pipeline_mode = #tpu.pipeline_mode<synchronous>, transform_indices = @transform_6, window_bounds = array<i64: 1, 128>}, {pipeline_mode = #tpu.pipeline_mode<synchronous>, transform_indices = @transform_7, window_bounds = array<i64: 128, 32>}, {pipeline_mode = #tpu.pipeline_mode<synchronous>, transform_indices = @transform_8, window_bounds = array<i64: 1, 32>}, {transform_indices = @transform_9, window_bounds = array<i64: 2, 32>}, {transform_indices = @transform_10, window_bounds = array<i64: 2, 128>}]} {
    %c0 = arith.constant 0 : index
    %c0_0 = arith.constant 0 : index
    %0 = vector.load %arg1[%c0, %c0_0] : memref<2x32xf32, #tpu.memory_space<vmem>>, vector<2x32xf32>
    %1 = arith.truncf %0 : vector<2x32xf32> to vector<2x32xbf16>
    %c0_1 = arith.constant 0 : index
    %c0_2 = arith.constant 0 : index
    %2 = vector.load %arg2[%c0_1, %c0_2] : memref<32x128xbf16, #tpu.memory_space<vmem>>, vector<32x128xbf16>
    %cst = arith.constant dense<0.000000e+00> : vector<2x128xf32>
    %3 = tpu.matmul %1, %2, %cst {dimension_numbers = #tpu.dot_dimension_numbers<[1], [0], [0], [1], [0, 0, 1, 1], [], []>} : vector<2x32xbf16>, vector<32x128xbf16>, vector<2x128xf32> -> vector<2x128xf32>
    %c0_3 = arith.constant 0 : index
    %c0_4 = arith.constant 0 : index
    %4 = vector.load %arg3[%c0_3, %c0_4] : memref<1x128xf32, #tpu.memory_space<vmem>>, vector<1x128xf32>
    %5 = vector.broadcast %4 : vector<1x128xf32> to vector<2x128xf32>
    %6 = arith.addf %3, %5 : vector<2x128xf32>
    %cst_5 = arith.constant 0.000000e+00 : f32
    %7 = vector.broadcast %cst_5 : f32 to vector<2x128xf32>
    %8 = arith.maximumf %6, %7 : vector<2x128xf32>
    %9 = arith.truncf %8 : vector<2x128xf32> to vector<2x128xbf16>
    %c0_6 = arith.constant 0 : index
    %c0_7 = arith.constant 0 : index
    %10 = vector.load %arg4[%c0_6, %c0_7] : memref<128x128xbf16, #tpu.memory_space<vmem>>, vector<128x128xbf16>
    %cst_8 = arith.constant dense<0.000000e+00> : vector<2x128xf32>
    %11 = tpu.matmul %9, %10, %cst_8 {dimension_numbers = #tpu.dot_dimension_numbers<[1], [0], [0], [1], [0, 0, 1, 1], [], []>} : vector<2x128xbf16>, vector<128x128xbf16>, vector<2x128xf32> -> vector<2x128xf32>
    %c0_9 = arith.constant 0 : index
    %c0_10 = arith.constant 0 : index
    %12 = vector.load %arg5[%c0_9, %c0_10] : memref<1x128xf32, #tpu.memory_space<vmem>>, vector<1x128xf32>
    %13 = vector.broadcast %12 : vector<1x128xf32> to vector<2x128xf32>
    %14 = arith.addf %11, %13 : vector<2x128xf32>
    %15 = tpu.iota {dimensions = array<i32: 1>} : vector<2x128xi32>
    %c2_i32 = arith.constant 2 : i32
    %16 = vector.broadcast %c2_i32 : i32 to vector<2x128xi32>
    %17 = arith.cmpi slt, %15, %16 : vector<2x128xi32>
    %c2_i32_11 = arith.constant 2 : i32
    %18 = vector.broadcast %c2_i32_11 : i32 to vector<2x128xi32>
    %19 = arith.cmpi eq, %15, %18 : vector<2x128xi32>
    %20 = arith.mulf %14, %14 : vector<2x128xf32>
    %cst_12 = arith.constant 0.000000e+00 : f32
    %21 = vector.broadcast %cst_12 : f32 to vector<2x128xf32>
    %22 = arith.select %17, %20, %21 : vector<2x128xi1>, vector<2x128xf32>
    %cst_13 = arith.constant dense<0.000000e+00> : vector<2xf32>
    %23 = vector.multi_reduction <add>, %22, %cst_13 [1] : vector<2x128xf32> to vector<2xf32>
    %24 = vector.shape_cast %23 : vector<2xf32> to vector<2x1xf32>
    %cst_14 = arith.constant 9.99999996E-13 : f32
    %25 = vector.broadcast %cst_14 : f32 to vector<2x1xf32>
    %26 = arith.addf %24, %25 : vector<2x1xf32>
    %27 = math.rsqrt %26 : vector<2x1xf32>
    %28 = vector.broadcast %27 : vector<2x1xf32> to vector<2x128xf32>
    %29 = arith.mulf %14, %28 : vector<2x128xf32>
    %cst_15 = arith.constant 0.000000e+00 : f32
    %30 = vector.broadcast %cst_15 : f32 to vector<2x128xf32>
    %31 = arith.maximumf %14, %30 : vector<2x128xf32>
    %32 = math.absf %14 : vector<2x128xf32>
    %cst_16 = arith.constant 0.000000e+00 : f32
    %33 = vector.broadcast %cst_16 : f32 to vector<2x128xf32>
    %34 = arith.subf %33, %32 : vector<2x128xf32>
    %35 = math.exp %34 : vector<2x128xf32>
    %cst_17 = arith.constant 1.000000e+00 : f32
    %36 = vector.broadcast %cst_17 : f32 to vector<2x128xf32>
    %37 = arith.addf %36, %35 : vector<2x128xf32>
    %38 = math.log %37 : vector<2x128xf32>
    %39 = arith.addf %31, %38 : vector<2x128xf32>
    %cst_18 = arith.constant 1.000000e+00 : f32
    %40 = vector.broadcast %cst_18 : f32 to vector<2x128xf32>
    %41 = arith.addf %39, %40 : vector<2x128xf32>
    %cst_19 = arith.constant 0.000000e+00 : f32
    %42 = vector.broadcast %cst_19 : f32 to vector<2x128xf32>
    %43 = arith.select %19, %41, %42 : vector<2x128xi1>, vector<2x128xf32>
    %44 = arith.select %17, %29, %43 : vector<2x128xi1>, vector<2x128xf32>
    %c0_20 = arith.constant 0 : index
    %c0_21 = arith.constant 0 : index
    %45 = vector.load %arg11[%c0_20, %c0_21] : memref<2x128xf32, #tpu.memory_space<vmem>>, vector<2x128xf32>
    tpu.vector_store %arg11[%c0_20, %c0_21], %44 {strides = array<i32>} : memref<2x128xf32, #tpu.memory_space<vmem>>, vector<2x128xf32>,
    %46 = arith.truncf %44 : vector<2x128xf32> to vector<2x128xbf16>
    %c0_22 = arith.constant 0 : index
    %c0_23 = arith.constant 0 : index
    %47 = vector.load %arg6[%c0_22, %c0_23] : memref<128x128xbf16, #tpu.memory_space<vmem>>, vector<128x128xbf16>
    %cst_24 = arith.constant dense<0.000000e+00> : vector<2x128xf32>
    %48 = tpu.matmul %46, %47, %cst_24 {dimension_numbers = #tpu.dot_dimension_numbers<[1], [0], [0], [1], [0, 0, 1, 1], [], []>} : vector<2x128xbf16>, vector<128x128xbf16>, vector<2x128xf32> -> vector<2x128xf32>
    %c0_25 = arith.constant 0 : index
    %c0_26 = arith.constant 0 : index
    %49 = vector.load %arg7[%c0_25, %c0_26] : memref<1x128xf32, #tpu.memory_space<vmem>>, vector<1x128xf32>
    %50 = vector.broadcast %49 : vector<1x128xf32> to vector<2x128xf32>
    %51 = arith.addf %48, %50 : vector<2x128xf32>
    %cst_27 = arith.constant 0.000000e+00 : f32
    %52 = vector.broadcast %cst_27 : f32 to vector<2x128xf32>
    %53 = arith.maximumf %51, %52 : vector<2x128xf32>
    %54 = arith.truncf %53 : vector<2x128xf32> to vector<2x128xbf16>
    %c0_28 = arith.constant 0 : index
    %c0_29 = arith.constant 0 : index
    %55 = vector.load %arg8[%c0_28, %c0_29] : memref<128x32xbf16, #tpu.memory_space<vmem>>, vector<128x32xbf16>
    %cst_30 = arith.constant dense<0.000000e+00> : vector<2x32xf32>
    %56 = tpu.matmul %54, %55, %cst_30 {dimension_numbers = #tpu.dot_dimension_numbers<[1], [0], [0], [1], [0, 0, 1, 1], [], []>} : vector<2x128xbf16>, vector<128x32xbf16>, vector<2x32xf32> -> vector<2x32xf32>
    %c0_31 = arith.constant 0 : index
    %c0_32 = arith.constant 0 : index
    %57 = vector.load %arg9[%c0_31, %c0_32] : memref<1x32xf32, #tpu.memory_space<vmem>>, vector<1x32xf32>
    %58 = vector.broadcast %57 : vector<1x32xf32> to vector<2x32xf32>
    %59 = arith.addf %56, %58 : vector<2x32xf32>
    %60 = vector.extract_strided_slice %59 {offsets = [0, 0], sizes = [2, 8], strides = [1, 1]} : vector<2x32xf32> to vector<2x8xf32>
    %61 = vector.extract_strided_slice %59 {offsets = [0, 8], sizes = [2, 8], strides = [1, 1]} : vector<2x32xf32> to vector<2x8xf32>
    %62 = vector.extract_strided_slice %59 {offsets = [0, 16], sizes = [2, 8], strides = [1, 1]} : vector<2x32xf32> to vector<2x8xf32>
    %63 = vector.extract_strided_slice %59 {offsets = [0, 24], sizes = [2, 8], strides = [1, 1]} : vector<2x32xf32> to vector<2x8xf32>
    %64 = arith.maximumf %60, %61 : vector<2x8xf32>
    %65 = arith.maximumf %64, %62 : vector<2x8xf32>
    %66 = arith.maximumf %65, %63 : vector<2x8xf32>
    %67 = arith.subf %60, %66 : vector<2x8xf32>
    %68 = math.exp %67 : vector<2x8xf32>
    %69 = arith.subf %61, %66 : vector<2x8xf32>
    %70 = math.exp %69 : vector<2x8xf32>
    %71 = arith.addf %68, %70 : vector<2x8xf32>
    %72 = arith.subf %62, %66 : vector<2x8xf32>
    %73 = math.exp %72 : vector<2x8xf32>
    %74 = arith.addf %71, %73 : vector<2x8xf32>
    %75 = arith.subf %63, %66 : vector<2x8xf32>
    %76 = math.exp %75 : vector<2x8xf32>
    %77 = arith.addf %74, %76 : vector<2x8xf32>
    %78 = math.log %77 : vector<2x8xf32>
    %79 = arith.addf %66, %78 : vector<2x8xf32>
    %80 = arith.subf %60, %79 : vector<2x8xf32>
    %c0_33 = arith.constant 0 : index
    %c0_34 = arith.constant 0 : index
    %81 = vector.load %arg10[%c0_33, %c0_34] : memref<2x32xf32, #tpu.memory_space<vmem>>, vector<2x8xf32>
    tpu.vector_store %arg10[%c0_33, %c0_34], %80 {strides = array<i32>} : memref<2x32xf32, #tpu.memory_space<vmem>>, vector<2x8xf32>,
    %82 = arith.subf %61, %79 : vector<2x8xf32>
    %c0_35 = arith.constant 0 : index
    %c8 = arith.constant 8 : index
    %83 = vector.load %arg10[%c0_35, %c8] : memref<2x32xf32, #tpu.memory_space<vmem>>, vector<2x8xf32>
    tpu.vector_store %arg10[%c0_35, %c8], %82 {strides = array<i32>} : memref<2x32xf32, #tpu.memory_space<vmem>>, vector<2x8xf32>,
    %84 = arith.subf %62, %79 : vector<2x8xf32>
    %c0_36 = arith.constant 0 : index
    %c16 = arith.constant 16 : index
    %85 = vector.load %arg10[%c0_36, %c16] : memref<2x32xf32, #tpu.memory_space<vmem>>, vector<2x8xf32>
    tpu.vector_store %arg10[%c0_36, %c16], %84 {strides = array<i32>} : memref<2x32xf32, #tpu.memory_space<vmem>>, vector<2x8xf32>,
    %86 = arith.subf %63, %79 : vector<2x8xf32>
    %c0_37 = arith.constant 0 : index
    %c24 = arith.constant 24 : index
    %87 = vector.load %arg10[%c0_37, %c24] : memref<2x32xf32, #tpu.memory_space<vmem>>, vector<2x8xf32>
    tpu.vector_store %arg10[%c0_37, %c24], %86 {strides = array<i32>} : memref<2x32xf32, #tpu.memory_space<vmem>>, vector<2x8xf32>,
    return
  }
  func.func @transform_0(%arg0: i32) -> (i32, i32) {
    %c0_i32 = arith.constant 0 : i32
    %c0_i32_0 = arith.constant 0 : i32
    return %arg0, %c0_i32 : i32, i32
  }
  func.func @transform_1(%arg0: i32) -> (i32, i32) {
    %c0_i32 = arith.constant 0 : i32
    %c0_i32_0 = arith.constant 0 : i32
    %c0_i32_1 = arith.constant 0 : i32
    return %c0_i32, %c0_i32_0 : i32, i32
  }
  func.func @transform_2(%arg0: i32) -> (i32, i32) {
    %c0_i32 = arith.constant 0 : i32
    %c0_i32_0 = arith.constant 0 : i32
    %c0_i32_1 = arith.constant 0 : i32
    return %c0_i32, %c0_i32_0 : i32, i32
  }
  func.func @transform_3(%arg0: i32) -> (i32, i32) {
    %c0_i32 = arith.constant 0 : i32
    %c0_i32_0 = arith.constant 0 : i32
    %c0_i32_1 = arith.constant 0 : i32
    return %c0_i32, %c0_i32_0 : i32, i32
  }
  func.func @transform_4(%arg0: i32) -> (i32, i32) {
    %c0_i32 = arith.constant 0 : i32
    %c0_i32_0 = arith.constant 0 : i32
    %c0_i32_1 = arith.constant 0 : i32
    return %c0_i32, %c0_i32_0 : i32, i32
  }
  func.func @transform_5(%arg0: i32) -> (i32, i32) {
    %c0_i32 = arith.constant 0 : i32
    %c0_i32_0 = arith.constant 0 : i32
    %c0_i32_1 = arith.constant 0 : i32
    return %c0_i32, %c0_i32_0 : i32, i32
  }
  func.func @transform_6(%arg0: i32) -> (i32, i32) {
    %c0_i32 = arith.constant 0 : i32
    %c0_i32_0 = arith.constant 0 : i32
    %c0_i32_1 = arith.constant 0 : i32
    return %c0_i32, %c0_i32_0 : i32, i32
  }
  func.func @transform_7(%arg0: i32) -> (i32, i32) {
    %c0_i32 = arith.constant 0 : i32
    %c0_i32_0 = arith.constant 0 : i32
    %c0_i32_1 = arith.constant 0 : i32
    return %c0_i32, %c0_i32_0 : i32, i32
  }
  func.func @transform_8(%arg0: i32) -> (i32, i32) {
    %c0_i32 = arith.constant 0 : i32
    %c0_i32_0 = arith.constant 0 : i32
    %c0_i32_1 = arith.constant 0 : i32
    return %c0_i32, %c0_i32_0 : i32, i32
  }
  func.func @transform_9(%arg0: i32) -> (i32, i32) {
    %c0_i32 = arith.constant 0 : i32
    %c0_i32_0 = arith.constant 0 : i32
    return %arg0, %c0_i32 : i32, i32
  }
  func.func @transform_10(%arg0: i32) -> (i32, i32) {
    %c0_i32 = arith.constant 0 : i32
    %c0_i32_0 = arith.constant 0 : i32
    return %arg0, %c0_i32 : i32, i32
  }
}

module attributes {stable_mosaic.version = 11 : i64} {
  func.func @_svae_fused_kernel(%arg0: i32, %arg1: memref<2x32xf32, #tpu.memory_space<vmem>>, %arg2: memref<32x128xbf16, #tpu.memory_space<vmem>>, %arg3: memref<1x128xf32, #tpu.memory_space<vmem>>, %arg4: memref<128x128xbf16, #tpu.memory_space<vmem>>, %arg5: memref<1x128xf32, #tpu.memory_space<vmem>>, %arg6: memref<128x128xbf16, #tpu.memory_space<vmem>>, %arg7: memref<1x128xf32, #tpu.memory_space<vmem>>, %arg8: memref<128x32xbf16, #tpu.memory_space<vmem>>, %arg9: memref<1x32xf32, #tpu.memory_space<vmem>>, %arg10: memref<2x32xf32, #tpu.memory_space<vmem>>, %arg11: memref<2x128xf32, #tpu.memory_space<vmem>>) attributes {dimension_semantics = [#tpu.dimension_semantics<parallel>], iteration_bounds = array<i64: 1>, scalar_prefetch = 0 : i64, scratch_operands = 0 : i64, tpu.core_type = #tpu.core_type<tc>, window_params = [{transform_indices = @transform_0, window_bounds = array<i64: 2, 32>}, {pipeline_mode = #tpu.pipeline_mode<synchronous>, transform_indices = @transform_1, window_bounds = array<i64: 32, 128>}, {pipeline_mode = #tpu.pipeline_mode<synchronous>, transform_indices = @transform_2, window_bounds = array<i64: 1, 128>}, {pipeline_mode = #tpu.pipeline_mode<synchronous>, transform_indices = @transform_3, window_bounds = array<i64: 128, 128>}, {pipeline_mode = #tpu.pipeline_mode<synchronous>, transform_indices = @transform_4, window_bounds = array<i64: 1, 128>}, {pipeline_mode = #tpu.pipeline_mode<synchronous>, transform_indices = @transform_5, window_bounds = array<i64: 128, 128>}, {pipeline_mode = #tpu.pipeline_mode<synchronous>, transform_indices = @transform_6, window_bounds = array<i64: 1, 128>}, {pipeline_mode = #tpu.pipeline_mode<synchronous>, transform_indices = @transform_7, window_bounds = array<i64: 128, 32>}, {pipeline_mode = #tpu.pipeline_mode<synchronous>, transform_indices = @transform_8, window_bounds = array<i64: 1, 32>}, {transform_indices = @transform_9, window_bounds = array<i64: 2, 32>}, {transform_indices = @transform_10, window_bounds = array<i64: 2, 128>}]} {
    %c0 = arith.constant 0 : index
    %c0_0 = arith.constant 0 : index
    %0 = vector.load %arg1[%c0, %c0_0] : memref<2x32xf32, #tpu.memory_space<vmem>>, vector<2x32xf32>
    %1 = arith.truncf %0 : vector<2x32xf32> to vector<2x32xbf16>
    %c0_1 = arith.constant 0 : index
    %c0_2 = arith.constant 0 : index
    %2 = vector.load %arg2[%c0_1, %c0_2] : memref<32x128xbf16, #tpu.memory_space<vmem>>, vector<32x128xbf16>
    %cst = arith.constant dense<0.000000e+00> : vector<2x128xf32>
    %3 = tpu.matmul %1, %2, %cst {dimension_numbers = #tpu.dot_dimension_numbers<[1], [0], [0], [1], [0, 0, 1, 1], [], []>} : vector<2x32xbf16>, vector<32x128xbf16>, vector<2x128xf32> -> vector<2x128xf32>
    %c0_3 = arith.constant 0 : index
    %c0_4 = arith.constant 0 : index
    %4 = vector.load %arg3[%c0_3, %c0_4] : memref<1x128xf32, #tpu.memory_space<vmem>>, vector<1x128xf32>
    %5 = vector.broadcast %4 : vector<1x128xf32> to vector<2x128xf32>
    %6 = arith.addf %3, %5 : vector<2x128xf32>
    %cst_5 = arith.constant 0.000000e+00 : f32
    %7 = vector.broadcast %cst_5 : f32 to vector<2x128xf32>
    %8 = arith.maximumf %6, %7 : vector<2x128xf32>
    %9 = arith.truncf %8 : vector<2x128xf32> to vector<2x128xbf16>
    %c0_6 = arith.constant 0 : index
    %c0_7 = arith.constant 0 : index
    %10 = vector.load %arg4[%c0_6, %c0_7] : memref<128x128xbf16, #tpu.memory_space<vmem>>, vector<128x128xbf16>
    %cst_8 = arith.constant dense<0.000000e+00> : vector<2x128xf32>
    %11 = tpu.matmul %9, %10, %cst_8 {dimension_numbers = #tpu.dot_dimension_numbers<[1], [0], [0], [1], [0, 0, 1, 1], [], []>} : vector<2x128xbf16>, vector<128x128xbf16>, vector<2x128xf32> -> vector<2x128xf32>
    %c0_9 = arith.constant 0 : index
    %c0_10 = arith.constant 0 : index
    %12 = vector.load %arg5[%c0_9, %c0_10] : memref<1x128xf32, #tpu.memory_space<vmem>>, vector<1x128xf32>
    %13 = vector.broadcast %12 : vector<1x128xf32> to vector<2x128xf32>
    %14 = arith.addf %11, %13 : vector<2x128xf32>
    %15 = tpu.iota {dimensions = array<i32: 1>} : vector<2x128xi32>
    %c2_i32 = arith.constant 2 : i32
    %16 = vector.broadcast %c2_i32 : i32 to vector<2x128xi32>
    %17 = arith.cmpi slt, %15, %16 : vector<2x128xi32>
    %c2_i32_11 = arith.constant 2 : i32
    %18 = vector.broadcast %c2_i32_11 : i32 to vector<2x128xi32>
    %19 = arith.cmpi eq, %15, %18 : vector<2x128xi32>
    %20 = arith.mulf %14, %14 : vector<2x128xf32>
    %cst_12 = arith.constant 0.000000e+00 : f32
    %21 = vector.broadcast %cst_12 : f32 to vector<2x128xf32>
    %22 = arith.select %17, %20, %21 : vector<2x128xi1>, vector<2x128xf32>
    %cst_13 = arith.constant dense<0.000000e+00> : vector<2xf32>
    %23 = vector.multi_reduction <add>, %22, %cst_13 [1] : vector<2x128xf32> to vector<2xf32>
    %24 = vector.shape_cast %23 : vector<2xf32> to vector<2x1xf32>
    %cst_14 = arith.constant 9.99999996E-13 : f32
    %25 = vector.broadcast %cst_14 : f32 to vector<2x1xf32>
    %26 = arith.addf %24, %25 : vector<2x1xf32>
    %27 = math.rsqrt %26 : vector<2x1xf32>
    %28 = vector.broadcast %27 : vector<2x1xf32> to vector<2x128xf32>
    %29 = arith.mulf %14, %28 : vector<2x128xf32>
    %cst_15 = arith.constant 0.000000e+00 : f32
    %30 = vector.broadcast %cst_15 : f32 to vector<2x128xf32>
    %31 = arith.maximumf %14, %30 : vector<2x128xf32>
    %32 = math.absf %14 : vector<2x128xf32>
    %cst_16 = arith.constant 0.000000e+00 : f32
    %33 = vector.broadcast %cst_16 : f32 to vector<2x128xf32>
    %34 = arith.subf %33, %32 : vector<2x128xf32>
    %35 = math.exp %34 : vector<2x128xf32>
    %cst_17 = arith.constant 1.000000e+00 : f32
    %36 = vector.broadcast %cst_17 : f32 to vector<2x128xf32>
    %37 = arith.addf %36, %35 : vector<2x128xf32>
    %38 = math.log %37 : vector<2x128xf32>
    %39 = arith.addf %31, %38 : vector<2x128xf32>
    %cst_18 = arith.constant 1.000000e+00 : f32
    %40 = vector.broadcast %cst_18 : f32 to vector<2x128xf32>
    %41 = arith.addf %39, %40 : vector<2x128xf32>
    %cst_19 = arith.constant 0.000000e+00 : f32
    %42 = vector.broadcast %cst_19 : f32 to vector<2x128xf32>
    %43 = arith.select %19, %41, %42 : vector<2x128xi1>, vector<2x128xf32>
    %44 = arith.select %17, %29, %43 : vector<2x128xi1>, vector<2x128xf32>
    %c0_20 = arith.constant 0 : index
    %c0_21 = arith.constant 0 : index
    %45 = vector.load %arg11[%c0_20, %c0_21] : memref<2x128xf32, #tpu.memory_space<vmem>>, vector<2x128xf32>
    tpu.vector_store %arg11[%c0_20, %c0_21], %44 {strides = array<i32>} : memref<2x128xf32, #tpu.memory_space<vmem>>, vector<2x128xf32>,
    %46 = arith.truncf %44 : vector<2x128xf32> to vector<2x128xbf16>
    %c0_22 = arith.constant 0 : index
    %c0_23 = arith.constant 0 : index
    %47 = vector.load %arg6[%c0_22, %c0_23] : memref<128x128xbf16, #tpu.memory_space<vmem>>, vector<128x128xbf16>
    %cst_24 = arith.constant dense<0.000000e+00> : vector<2x128xf32>
    %48 = tpu.matmul %46, %47, %cst_24 {dimension_numbers = #tpu.dot_dimension_numbers<[1], [0], [0], [1], [0, 0, 1, 1], [], []>} : vector<2x128xbf16>, vector<128x128xbf16>, vector<2x128xf32> -> vector<2x128xf32>
    %c0_25 = arith.constant 0 : index
    %c0_26 = arith.constant 0 : index
    %49 = vector.load %arg7[%c0_25, %c0_26] : memref<1x128xf32, #tpu.memory_space<vmem>>, vector<1x128xf32>
    %50 = vector.broadcast %49 : vector<1x128xf32> to vector<2x128xf32>
    %51 = arith.addf %48, %50 : vector<2x128xf32>
    %cst_27 = arith.constant 0.000000e+00 : f32
    %52 = vector.broadcast %cst_27 : f32 to vector<2x128xf32>
    %53 = arith.maximumf %51, %52 : vector<2x128xf32>
    %54 = arith.truncf %53 : vector<2x128xf32> to vector<2x128xbf16>
    %c0_28 = arith.constant 0 : index
    %c0_29 = arith.constant 0 : index
    %55 = vector.load %arg8[%c0_28, %c0_29] : memref<128x32xbf16, #tpu.memory_space<vmem>>, vector<128x32xbf16>
    %cst_30 = arith.constant dense<0.000000e+00> : vector<2x32xf32>
    %56 = tpu.matmul %54, %55, %cst_30 {dimension_numbers = #tpu.dot_dimension_numbers<[1], [0], [0], [1], [0, 0, 1, 1], [], []>} : vector<2x128xbf16>, vector<128x32xbf16>, vector<2x32xf32> -> vector<2x32xf32>
    %c0_31 = arith.constant 0 : index
    %c0_32 = arith.constant 0 : index
    %57 = vector.load %arg9[%c0_31, %c0_32] : memref<1x32xf32, #tpu.memory_space<vmem>>, vector<1x32xf32>
    %58 = vector.broadcast %57 : vector<1x32xf32> to vector<2x32xf32>
    %59 = arith.addf %56, %58 : vector<2x32xf32>
    %60 = vector.extract_strided_slice %59 {offsets = [0, 0], sizes = [2, 8], strides = [1, 1]} : vector<2x32xf32> to vector<2x8xf32>
    %61 = vector.extract_strided_slice %59 {offsets = [0, 8], sizes = [2, 8], strides = [1, 1]} : vector<2x32xf32> to vector<2x8xf32>
    %62 = vector.extract_strided_slice %59 {offsets = [0, 16], sizes = [2, 8], strides = [1, 1]} : vector<2x32xf32> to vector<2x8xf32>
    %63 = vector.extract_strided_slice %59 {offsets = [0, 24], sizes = [2, 8], strides = [1, 1]} : vector<2x32xf32> to vector<2x8xf32>
    %64 = arith.maximumf %60, %61 : vector<2x8xf32>
    %65 = arith.maximumf %64, %62 : vector<2x8xf32>
    %66 = arith.maximumf %65, %63 : vector<2x8xf32>
    %67 = arith.subf %60, %66 : vector<2x8xf32>
    %68 = math.exp %67 : vector<2x8xf32>
    %69 = arith.subf %61, %66 : vector<2x8xf32>
    %70 = math.exp %69 : vector<2x8xf32>
    %71 = arith.addf %68, %70 : vector<2x8xf32>
    %72 = arith.subf %62, %66 : vector<2x8xf32>
    %73 = math.exp %72 : vector<2x8xf32>
    %74 = arith.addf %71, %73 : vector<2x8xf32>
    %75 = arith.subf %63, %66 : vector<2x8xf32>
    %76 = math.exp %75 : vector<2x8xf32>
    %77 = arith.addf %74, %76 : vector<2x8xf32>
    %78 = math.log %77 : vector<2x8xf32>
    %79 = arith.addf %66, %78 : vector<2x8xf32>
    %80 = arith.subf %60, %79 : vector<2x8xf32>
    %c0_33 = arith.constant 0 : index
    %c0_34 = arith.constant 0 : index
    %81 = vector.load %arg10[%c0_33, %c0_34] : memref<2x32xf32, #tpu.memory_space<vmem>>, vector<2x8xf32>
    tpu.vector_store %arg10[%c0_33, %c0_34], %80 {strides = array<i32>} : memref<2x32xf32, #tpu.memory_space<vmem>>, vector<2x8xf32>,
    %82 = arith.subf %61, %79 : vector<2x8xf32>
    %c0_35 = arith.constant 0 : index
    %c8 = arith.constant 8 : index
    %83 = vector.load %arg10[%c0_35, %c8] : memref<2x32xf32, #tpu.memory_space<vmem>>, vector<2x8xf32>
    tpu.vector_store %arg10[%c0_35, %c8], %82 {strides = array<i32>} : memref<2x32xf32, #tpu.memory_space<vmem>>, vector<2x8xf32>,
    %84 = arith.subf %62, %79 : vector<2x8xf32>
    %c0_36 = arith.constant 0 : index
    %c16 = arith.constant 16 : index
    %85 = vector.load %arg10[%c0_36, %c16] : memref<2x32xf32, #tpu.memory_space<vmem>>, vector<2x8xf32>
    tpu.vector_store %arg10[%c0_36, %c16], %84 {strides = array<i32>} : memref<2x32xf32, #tpu.memory_space<vmem>>, vector<2x8xf32>,
    %86 = arith.subf %63, %79 : vector<2x8xf32>
    %c0_37 = arith.constant 0 : index
    %c24 = arith.constant 24 : index
    %87 = vector.load %arg10[%c0_37, %c24] : memref<2x32xf32, #tpu.memory_space<vmem>>, vector<2x8xf32>
    tpu.vector_store %arg10[%c0_37, %c24], %86 {strides = array<i32>} : memref<2x32xf32, #tpu.memory_space<vmem>>, vector<2x8xf32>,
    return
  }
  func.func @transform_0(%arg0: i32) -> (i32, i32) {
    %c0_i32 = arith.constant 0 : i32
    %c0_i32_0 = arith.constant 0 : i32
    return %arg0, %c0_i32 : i32, i32
  }
  func.func @transform_1(%arg0: i32) -> (i32, i32) {
    %c0_i32 = arith.constant 0 : i32
    %c0_i32_0 = arith.constant 0 : i32
    %c0_i32_1 = arith.constant 0 : i32
    return %c0_i32, %c0_i32_0 : i32, i32
  }
  func.func @transform_2(%arg0: i32) -> (i32, i32) {
    %c0_i32 = arith.constant 0 : i32
    %c0_i32_0 = arith.constant 0 : i32
    %c0_i32_1 = arith.constant 0 : i32
    return %c0_i32, %c0_i32_0 : i32, i32
  }
  func.func @transform_3(%arg0: i32) -> (i32, i32) {
    %c0_i32 = arith.constant 0 : i32
    %c0_i32_0 = arith.constant 0 : i32
    %c0_i32_1 = arith.constant 0 : i32
    return %c0_i32, %c0_i32_0 : i32, i32
  }
  func.func @transform_4(%arg0: i32) -> (i32, i32) {
    %c0_i32 = arith.constant 0 : i32
    %c0_i32_0 = arith.constant 0 : i32
    %c0_i32_1 = arith.constant 0 : i32
    return %c0_i32, %c0_i32_0 : i32, i32
  }
  func.func @transform_5(%arg0: i32) -> (i32, i32) {
    %c0_i32 = arith.constant 0 : i32
    %c0_i32_0 = arith.constant 0 : i32
    %c0_i32_1 = arith.constant 0 : i32
    return %c0_i32, %c0_i32_0 : i32, i32
  }
  func.func @transform_6(%arg0: i32) -> (i32, i32) {
    %c0_i32 = arith.constant 0 : i32
    %c0_i32_0 = arith.constant 0 : i32
    %c0_i32_1 = arith.constant 0 : i32
    return %c0_i32, %c0_i32_0 : i32, i32
  }
  func.func @transform_7(%arg0: i32) -> (i32, i32) {
    %c0_i32 = arith.constant 0 : i32
    %c0_i32_0 = arith.constant 0 : i32
    %c0_i32_1 = arith.constant 0 : i32
    return %c0_i32, %c0_i32_0 : i32, i32
  }
  func.func @transform_8(%arg0: i32) -> (i32, i32) {
    %c0_i32 = arith.constant 0 : i32
    %c0_i32_0 = arith.constant 0 : i32
    %c0_i32_1 = arith.constant 0 : i32
    return %c0_i32, %c0_i32_0 : i32, i32
  }
  func.func @transform_9(%arg0: i32) -> (i32, i32) {
    %c0_i32 = arith.constant 0 : i32
    %c0_i32_0 = arith.constant 0 : i32
    return %arg0, %c0_i32 : i32, i32
  }
  func.func @transform_10(%arg0: i32) -> (i32, i32) {
    %c0_i32 = arith.constant 0 : i32
    %c0_i32_0 = arith.constant 0 : i32
    return %arg0, %c0_i32 : i32, i32
  }
}

</mosaic_0001>

<bundles_post_ra>
// kernel: tpu_custom_call.1
= control target key start
LH: loop header
LB: loop body
LE: loop exit
PB: predicated region body
PF: predicated region fallthrough
CT: control target
= control target key end

     0   :  { %16 = vsyncpa [#allocation3], 0  ;;  %s1077_s0 = inlined_call_operand.vmem [shape: f32[2,32], index: 0, kind: input, shape index: {}]   ;;  %s1078_s1 = inlined_call_operand.vmem [shape: bf16[32,128], index: 1, kind: input, shape index: {}]   ;;  %s1079_s2 = inlined_call_operand.vmem [shape: f32[1,128], index: 2, kind: input, shape index: {}]   ;;  %s1080_s3 = inlined_call_operand.vmem [shape: bf16[128,128], index: 3, kind: input, shape index: {}]   ;;  %s1081_s4 = inlined_call_operand.vmem [shape: f32[1,128], index: 4, kind: input, shape index: {}]   ;;  %s1082_s5 = inlined_call_operand.hbm [shape: bf16[128,128], index: 5, kind: input, shape index: {}]   ;;  %s1083_s6 = inlined_call_operand.vmem [shape: f32[1,128], index: 6, kind: input, shape index: {}]   ;;  %s1084_s7 = inlined_call_operand.vmem [shape: bf16[128,32], index: 7, kind: input, shape index: {}]   ;;  %s1085_s8 = inlined_call_operand.vmem [shape: f32[1,32], index: 8, kind: input, shape index: {}]   ;;  %s1086_s9 = inlined_call_operand.hbm [shape: f32[2,32], index: 9, kind: output, shape index: {0}]   ;;  %s1087_s10 = inlined_call_operand.hbm [shape: f32[2,128], index: 10, kind: output, shape index: {1}]  }
   0x1   :  { %17 = vsyncpa [#allocation4], 0 }
   0x2   :  { %18 = vsyncpa [#allocation7], 0  ;;  %s844_s13 = smov [#allocation2]   ;;  %s772_s17 = scalar_lea.hbm %s1082_s5, 1024 }
   0x3   :  { %s34_s14 = sshll.u32 %s844_s13, 4  ;;  %p773_p0 = scmp.ne.s32.totalorder %s1082_s5, %s772_s17  ;;  %s35_s14 = int_to_ptr.vmem [resolvable:$true] %s34_s14 }
   0x4   :  { %p776_p1 = scmp.lt.u32.totalorder %s772_s17, %s1082_s5 }
   0x6   :  { %p778_p2 = pnand %p776_p1, %p773_p0 }
   0x8   :  { %781 = shalt.err (!%p778_p2)
}
   0x9   :  { %s782_s22 = scalar_lea.vmem %s35_s14, 1024  ;;  %p787_p4 = scmp.lt.s32.totalorder %s35_s14, %s35_s14 }
   0xa   :  { %p783_p3 = scmp.ne.s32.totalorder %s35_s14, %s782_s22  ;;  %p788_p5 = scmp.lt.s32.totalorder %s782_s22, %s782_s22 }
   0xc   :  { %p789_p6 = por %p788_p5, %p787_p4 }
   0xe   :  { %p790_p7 = pnand %p789_p6, %p783_p3 }
  0x10   :  { %793 = shalt.err (!%p790_p7)
}
  0x11   :  { %s845_s23 = smov 64   ;;  %s846_s24 = smov 4  }
  0x12   :  { %40 = dma.hbm_to_vmem [thread:$0]  %s1082_s5, 1024, %s35_s14, [#allocation3], %s845_s23, %s845_s23, %s846_s24  }
  0x13   :  { %838 = dma.done.wait [#allocation3], 1024  }
  0x14   :  { %839 = vsyncadd [#allocation3], 4294966272  ;;  %v847_v0 = vmov 0.0   ;;  %vm848_vm0 = vmmov 0   ;;  %v730_v1 = vld [vmem:[%s1078_s1] sm:$0xff]   ;;  %v731_v2 = vld [vmem:[%s1078_s1 + $0x8] sm:$0xff]   ;;  %v233_v25 = vlaneseq }
  0x15   :  { %649 = vmatprep.subr.bf16.mxu0 %v847_v0  ;;  %653 = vmatprep.mubr.msk.bf16.mxu0 %vm848_vm0, %v847_v0  ;;  %v51_v3 = vld [vmem:[%s1077_s0] sm:$0x3]  ;;  %v733_v6 = vld [vmem:[%s1080_s3 + $0x8] sm:$0xff]   ;;  %vm76_vm1 = vcmask 261120   ;;  %v734_v7 = vld [vmem:[%s1080_s3 + $0x10] sm:$0xff]   ;;  %vm239_vm3 = vcmask 1041408  }
  0x16   :  { %657 = vmatprep.subr.bf16.mxu1 %v847_v0  ;;  %673 = vmatprep.mubr.msk.bf16.mxu1 %vm848_vm0, %v847_v0  ;;  %v732_v4 = vld [vmem:[%s1080_s3] sm:$0xff]   ;;  %v52_v5 = vpack.c.bf16 %v51_v3, %v51_v3  ;;  %v735_v8 = vld [vmem:[%s1080_s3 + $0x18] sm:$0xff]   ;;  %v737_v10 = vld [vmem:[%s1080_s3 + $0x28] sm:$0xff]   ;;  %v234_v27 = vand.u32 127, %v233_v25  ;;  %s851_s24 = smov 104   ;;  %s853_s25 = smov 16  }
  0x17   :  { %650 = vmatpush3.bf16.msra.mxu0 %v730_v1  ;;  %658 = vmatpush3.bf16.msra.mxu1 %v732_v4  ;;  %v736_v9 = vld [vmem:[%s1080_s3 + $0x20] sm:$0xff]   ;;  %v738_v11 = vld [vmem:[%s1080_s3 + $0x30] sm:$0xff]   ;;  %v739_v12 = vld [vmem:[%s1080_s3 + $0x38] sm:$0xff]   ;;  %s854_s26 = smov 24   ;;  %s855_s27 = smov [#allocation6]  }
  0x18   :  { %651 = vmatprep.subr.bf16.mxu0 %v847_v0  ;;  %659 = vmatprep.subr.bf16.mxu1 %v847_v0  ;;  %v588_v13 = vld [vmem:[%s1079_s2] ss:$0 sm:$0xff]  ;;  %v741_v22 = vld [vmem:[#allocation2 + $0x8] sm:$0xff]   ;;  %v742_v23 = vld [vmem:[#allocation2 + $0x10] sm:$0xff]   ;;  %vm235_vm2 = vcmp.lt.s32.totalorder %v234_v27, 2  ;;  %vm236_vm4 = vcmp.eq.s32.totalorder %v234_v27, 2 }
  0x19   :  { %v740_v21 = vld [vmem:[#allocation2] sm:$0xff]   ;;  %v743_v24 = vld [vmem:[#allocation2 + $0x18] sm:$0xff]   ;;  %v745_v37 = vld [vmem:[#allocation2 + $0x28] sm:$0xff]   ;;  %s575_s2 = sshll.u32 %s855_s27, 4  ;;  %s576_s2 = int_to_ptr.vmem [resolvable:$true] %s575_s2 }
  0x1a   :  { %v592_v26 = vld [vmem:[%s1081_s4] ss:$0 sm:$0xff]  ;;  %v746_v38 = vld [vmem:[#allocation2 + $0x30] sm:$0xff]   ;;  %v747_v39 = vld [vmem:[#allocation2 + $0x38] sm:$0xff]   ;;  %s794_s3 = scalar_lea.vmem %s576_s2, 32  ;;  %p799_p9 = scmp.lt.s32.totalorder %s576_s2, %s576_s2 }
  0x1b   :  { %652 = vmatpush3.bf16.msra.mxu0 %v731_v2  ;;  %660 = vmatpush3.bf16.msra.mxu1 %v733_v6  ;;  %v744_v36 = vld [vmem:[#allocation2 + $0x20] sm:$0xff]   ;;  %v749_v41 = vld [vmem:[%s1084_s7 + $0x8] sm:$0xff]   ;;  %v750_v42 = vld [vmem:[%s1084_s7 + $0x10] sm:$0xff]   ;;  %p795_p8 = scmp.ne.s32.totalorder %s576_s2, %s794_s3  ;;  %p800_p10 = scmp.lt.s32.totalorder %s794_s3, %s794_s3 }
  0x1c   :  { %677 = vmatprep.subr.bf16.mxu0 %v847_v0  ;;  %661 = vmatprep.subr.bf16.mxu1 %v847_v0  ;;  %v748_v40 = vld [vmem:[%s1084_s7] sm:$0xff]   ;;  %v751_v43 = vld [vmem:[%s1084_s7 + $0x18] sm:$0xff]   ;;  %v753_v45 = vld [vmem:[%s1084_s7 + $0x28] sm:$0xff]  }
  0x1d   :  { %v752_v44 = vld [vmem:[%s1084_s7 + $0x20] sm:$0xff]   ;;  %v754_v63 = vld [vmem:[%s1084_s7 + $0x30] sm:$0xff]   ;;  %v755_v1 = vld [vmem:[%s1084_s7 + $0x38] sm:$0xff]   ;;  %s849_s7 = smov 112   ;;  %p801_p11 = por %p800_p10, %p799_p9 }
  0x1e   :  { %654 = vmatmul.mubr.msk.bf16.vlgmr.msra.gmra.mrb[0].mxu0 %vm76_vm1, %v52_v5  ;;  %v601_v2 = vld [vmem:[%s1083_s6] ss:$0 sm:$0xff]  ;;  %s850_s6 = smov 120  }
  0x1f   :  { %693 = vmatprep.mubr.msk.bf16.mxu0 %vm848_vm0, %v847_v0  ;;  %662 = vmatpush3.bf16.msra.mxu1 %v734_v7  ;;  %p802_p12 = pnand %p801_p11, %p795_p8 }
  0x20   :  { %663 = vmatprep.subr.bf16.mxu1 %v847_v0  ;;  %678 = vmatpush3.bf16.msra.mxu0 %v740_v21 }
  0x21   :  { %679 = vmatprep.subr.bf16.mxu0 %v847_v0 }
  0x23   :  { %664 = vmatpush3.bf16.msra.mxu1 %v735_v8 }
  0x24   :  { %665 = vmatprep.subr.bf16.mxu1 %v847_v0  ;;  %680 = vmatpush3.bf16.msra.mxu0 %v741_v22 }
  0x25   :  { %681 = vmatprep.subr.bf16.mxu0 %v847_v0 }
  0x27   :  { %666 = vmatpush3.bf16.msra.mxu1 %v736_v9 }
  0x28   :  { %667 = vmatprep.subr.bf16.mxu1 %v847_v0  ;;  %682 = vmatpush3.bf16.msra.mxu0 %v742_v23 }
  0x29   :  { %683 = vmatprep.subr.bf16.mxu0 %v847_v0 }
  0x2b   :  { %668 = vmatpush3.bf16.msra.mxu1 %v737_v10 }
  0x2c   :  { %669 = vmatprep.subr.bf16.mxu1 %v847_v0  ;;  %684 = vmatpush3.bf16.msra.mxu0 %v743_v24 }
  0x2d   :  { %685 = vmatprep.subr.bf16.mxu0 %v847_v0 }
  0x2f   :  { %670 = vmatpush3.bf16.msra.mxu1 %v738_v11 }
  0x30   :  { %671 = vmatprep.subr.bf16.mxu1 %v847_v0  ;;  %686 = vmatpush3.bf16.msra.mxu0 %v744_v36 }
  0x31   :  { %687 = vmatprep.subr.bf16.mxu0 %v847_v0 }
  0x33   :  { %672 = vmatpush3.bf16.msra.mxu1 %v739_v12 }
  0x34   :  { %697 = vmatprep.subr.bf16.mxu1 %v847_v0  ;;  %688 = vmatpush3.bf16.msra.mxu0 %v745_v37 }
  0x35   :  { %689 = vmatprep.subr.bf16.mxu0 %v847_v0 }
  0x38   :  { %690 = vmatpush3.bf16.msra.mxu0 %v746_v38 }
  0x39   :  { %691 = vmatprep.subr.bf16.mxu0 %v847_v0 }
  0x3c   :  { %692 = vmatpush3.bf16.msra.mxu0 %v747_v39 }
  0xf1   :  { %v114_v14 = vpop.f32.mrb[0].mxu0 }
  0xf2   :  { %v115_v15 = vadd.f32 %v588_v13, %v114_v14  ;;  %v655_v16 = vpop.f32.mrb[1].mxu0 }
  0xf3   :  { %v117_v17 = vpop.f32.mrb[2].mxu0 }
  0xf4   :  { %v120_v18 = vmax.f32 %v115_v15, 0.0  ;;  %v656_v19 = vpop.f32.mrb[3].mxu0 }
  0xf6   :  { %v121_v20 = vpack.c.bf16 %v120_v18, %v120_v18 }
  0xf8   :  { %674 = vmatmul.mubr.bf16.vlgmr.msra.gmra.mrb[0].mxu1 %v121_v20 }
  0xf9   :  { %713 = vmatprep.mubr.msk.bf16.mxu1 %vm848_vm0, %v847_v0  ;;  %698 = vmatpush3.bf16.msra.mxu1 %v748_v40 }
  0xfa   :  { %699 = vmatprep.subr.bf16.mxu1 %v847_v0 }
  0xfd   :  { %700 = vmatpush3.bf16.msra.mxu1 %v749_v41 }
  0xfe   :  { %701 = vmatprep.subr.bf16.mxu1 %v847_v0 }
 0x101   :  { %702 = vmatpush3.bf16.msra.mxu1 %v750_v42 }
 0x102   :  { %703 = vmatprep.subr.bf16.mxu1 %v847_v0 }
 0x105   :  { %704 = vmatpush3.bf16.msra.mxu1 %v751_v43 }
 0x106   :  { %705 = vmatprep.subr.bf16.mxu1 %v847_v0 }
 0x109   :  { %706 = vmatpush3.bf16.msra.mxu1 %v752_v44 }
 0x10a   :  { %707 = vmatprep.subr.bf16.mxu1 %v847_v0 }
 0x10d   :  { %708 = vmatpush3.bf16.msra.mxu1 %v753_v45 }
 0x10e   :  { %709 = vmatprep.subr.bf16.mxu1 %v847_v0 }
 0x111   :  { %710 = vmatpush3.bf16.msra.mxu1 %v754_v63 }
 0x112   :  { %711 = vmatprep.subr.bf16.mxu1 %v847_v0  ;;  %v610_v0 = vld [vmem:[%s1085_s8] ss:$0 sm:$0xff]  ;;  %s852_s8 = smov 8  }
 0x115   :  { %712 = vmatpush3.bf16.msra.mxu1 %v755_v1 }
 0x1cb   :  { %v227_v28 = vpop.f32.mrb[0].mxu1 }
 0x1cc   :  { %v228_v29 = vadd.f32 %v592_v26, %v227_v28  ;;  %v675_v30 = vpop.f32.mrb[1].mxu1 }
 0x1cd   :  { %v230_v31 = vpop.f32.mrb[2].mxu1 }
 0x1ce   :  { %v676_v32 = vpop.f32.mrb[3].mxu1  ;;  %v237_v33 = vmul.f32 %v228_v29, %v228_v29  ;;  %v247_v46 = vand.u32 2147483647, %v228_v29  ;;  %v246_v55 = vmax.f32 %v228_v29, 0.0 }
 0x1d0   :  { %v238_v34 = vsel %vm235_vm2, %v237_v33, 0.0  ;;  %v248_v47 = vsub.f32 0.0, %v247_v46 }
 0x1d1   :  { %v240_v35 = vsel %vm239_vm3, %v238_v34, 0.0 }
 0x1d2   :  { %241 = vadd.xlane.f32.xlu0 %v240_v35  ;;  %v249_v48 = vmul.f32 1.442695, %v248_v47 }
 0x1d4   :  { %756 = vpow2.f32 %v249_v48 }
 0x1de   :  { %v757_v49 = vpop.eup %756 }
 0x1df   :  { %v251_v50 = vadd.f32 1.0, %v757_v49 }
 0x1e1   :  { %758 = vlog2.f32 %v251_v50 }
 0x1eb   :  { %v759_v51 = vpop.eup %758 }
 0x1ec   :  { %v253_v54 = vmul.f32 0.6931472, %v759_v51 }
 0x1ee   :  { %v254_v56 = vadd.f32 %v253_v54, %v246_v55 }
 0x1f0   :  { %v255_v57 = vadd.f32 1.0, %v254_v56 }
 0x1f2   :  { %v256_v60 = vsel %vm236_vm4, %v255_v57, 0.0 }
 0x25f   :  { %v242_v52 = vpop.xlane.xlu0 %241 }
 0x260   :  { %v243_v53 = vadd.f32 1e-12, %v242_v52 }
 0x262   :  { %760 = vrsqrt.f32 %v243_v53 }
 0x26c   :  { %v761_v58 = vpop.eup %760 }
 0x26d   :  { %v245_v59 = vmul.f32 %v761_v58, %v228_v29 }
 0x26f   :  { %v257_v61 = vsel %vm235_vm2, %v245_v59, %v256_v60 }
 0x270   :  { %v259_v62 = vpack.c.bf16 %v257_v61, %v257_v61  ;;  %258 = vst [vmem:[#allocation6] sm:$0x3] %v257_v61 }
 0x272   :  { %694 = vmatmul.mubr.bf16.vlgmr.msra.gmra.mrb[4].mxu0 %v259_v62 }
 0x345   :  { %v365_v3 = vpop.f32.mrb[4].mxu0 }
 0x346   :  { %v366_v4 = vadd.f32 %v601_v2, %v365_v3  ;;  %v695_v5 = vpop.f32.mrb[5].mxu0 }
 0x347   :  { %v368_v6 = vpop.f32.mrb[6].mxu0 }
 0x348   :  { %v371_v7 = vmax.f32 %v366_v4, 0.0  ;;  %v696_v8 = vpop.f32.mrb[7].mxu0 }
 0x34a   :  { %v372_v9 = vpack.c.bf16 %v371_v7, %v371_v7 }
 0x34c   :  { %714 = vmatmul.mubr.bf16.vlgmr.msra.gmra.mrb[4].mxu1 %v372_v9 }
 0x41f   :  { %v478_v10 = vpop.f32.mrb[4].mxu1 }
 0x420   :  { %v1029_v11 = vadd.f32 %v610_v0, %v478_v10  ;;  %v715_v12 = vpop.f32.mrb[5].mxu1 }
 0x421   :  { %v481_v13 = vpop.f32.mrb[6].mxu1 }
 0x422   :  { %489 = vrot.lane.b32.xlu1 %v1029_v11, %s849_s7  ;;  %485 = vrot.lane.b32.xlu0 %v1029_v11, %s850_s6  ;;  %v716_v14 = vpop.f32.mrb[7].mxu1 }
 0x426   :  { %493 = vrot.lane.b32.xlu1 %v1029_v11, %s851_s24 }
 0x494   :  { %v490_v15 = vpop.permute.xlu1 %489  ;;  %v486_v16 = vpop.permute.xlu0 %485 }
 0x495   :  { %v488_v17 = vmax.f32 %v1029_v11, %v486_v16 }
 0x497   :  { %v492_v18 = vmax.f32 %v488_v17, %v490_v15 }
 0x498   :  { %v494_v19 = vpop.permute.xlu1 %493 }
 0x499   :  { %v496_v20 = vmax.f32 %v492_v18, %v494_v19 }
 0x49b   :  { %501 = vrot.lane.b32.xlu1 %v496_v20, %s852_s8  ;;  %v497_v33 = vsub.f32 %v1029_v11, %v496_v20 }
 0x49d   :  { %v498_v34 = vmul.f32 1.442695, %v497_v33 }
 0x49f   :  { %512 = vrot.lane.b32.xlu1 %v496_v20, %s853_s25 }
 0x4a3   :  { %523 = vrot.lane.b32.xlu1 %v496_v20, %s854_s26 }
 0x50d   :  { %v502_v21 = vpop.permute.xlu1 %501 }
 0x50e   :  { %v504_v22 = vsub.f32 %v1029_v11, %v502_v21 }
 0x510   :  { %v505_v23 = vmul.f32 1.442695, %v504_v22 }
 0x511   :  { %v513_v24 = vpop.permute.xlu1 %512 }
 0x512   :  { %762 = vpow2.f32 %v505_v23  ;;  %v515_v25 = vsub.f32 %v1029_v11, %v513_v24 }
 0x514   :  { %v516_v26 = vmul.f32 1.442695, %v515_v25 }
 0x515   :  { %v524_v27 = vpop.permute.xlu1 %523 }
 0x516   :  { %764 = vpow2.f32 %v516_v26  ;;  %v526_v28 = vsub.f32 %v1029_v11, %v524_v27 }
 0x518   :  { %v527_v29 = vmul.f32 1.442695, %v526_v28 }
 0x51a   :  { %766 = vpow2.f32 %v527_v29 }
 0x51b   :  { %768 = vpow2.f32 %v498_v34 }
 0x51c   :  { %v763_v30 = vpop.eup %762 }
 0x51d   :  { %508 = vrot.lane.b32.xlu1 %v763_v30, %s850_s6 }
 0x520   :  { %v765_v31 = vpop.eup %764 }
 0x521   :  { %519 = vrot.lane.b32.xlu1 %v765_v31, %s849_s7 }
 0x524   :  { %v767_v32 = vpop.eup %766 }
 0x525   :  { %530 = vrot.lane.b32.xlu0 %v767_v32, %s851_s24  ;;  %v769_v36 = vpop.eup %768 }
 0x58f   :  { %v509_v35 = vpop.permute.xlu1 %508 }
 0x590   :  { %v511_v38 = vadd.f32 %v769_v36, %v509_v35 }
 0x593   :  { %v520_v37 = vpop.permute.xlu1 %519 }
 0x594   :  { %v522_v39 = vadd.f32 %v520_v37, %v511_v38 }
 0x597   :  { %v531_v40 = vpop.permute.xlu0 %530 }
 0x598   :  { %v533_v41 = vadd.f32 %v531_v40, %v522_v39 }
 0x59a   :  { %770 = vlog2.f32 %v533_v41 }
 0x59b   :  { %805 = shalt.err (!%p802_p12)
}
 0x59c   :  { %s806_s29 = scalar_lea.hbm %s1087_s10, 32 }
 0x59d   :  { %p807_p13 = scmp.ne.s32.totalorder %s1087_s10, %s806_s29  ;;  %p810_p0 = scmp.lt.u32.totalorder %s806_s29, %s1087_s10 }
 0x59f   :  { %p812_p1 = pnand %p810_p0, %p807_p13 }
 0x5a1   :  { %815 = shalt.err (!%p812_p1)
}
 0x5a2   :  { %578 = dma.vmem_to_hbm [thread:$0]  %s576_s2, 32, %s1087_s10, [#allocation7]   ;;  %vm538_vm5 = vcmask 58368   ;;  %vm545_vm6 = vcmask 123968   ;;  %vm551_vm7 = vcmask 189568   ;;  %vm557_vm8 = vcmask 255168  }
 0x5a3   :  { %s856_s10 = smov [#allocation5]  }
 0x5a4   :  { %v771_v42 = vpop.eup %770  ;;  %s565_s15 = sshll.u32 %s856_s10, 4  ;;  %s566_s15 = int_to_ptr.vmem [resolvable:$true] %s565_s15 }
 0x5a5   :  { %v535_v43 = vmul.f32 0.6931472, %v771_v42  ;;  %s816_s1 = scalar_lea.vmem %s566_s15, 32  ;;  %p821_p3 = scmp.lt.s32.totalorder %s566_s15, %s566_s15 }
 0x5a6   :  { %p817_p2 = scmp.ne.s32.totalorder %s566_s15, %s816_s1  ;;  %p822_p4 = scmp.lt.s32.totalorder %s816_s1, %s816_s1 }
 0x5a7   :  { %v536_v44 = vadd.f32 %v535_v43, %v496_v20 }
 0x5a8   :  { %p823_p5 = por %p822_p4, %p821_p3 }
 0x5a9   :  { %v537_v45 = vsub.f32 %v1029_v11, %v536_v44  ;;  %547 = vrot.lane.b32.xlu0 %v536_v44, %s853_s25  ;;  %541 = vrot.lane.b32.xlu1 %v536_v44, %s852_s8 }
 0x5aa   :  { %p824_p6 = pnand %p823_p5, %p817_p2 }
 0x5ab   :  { %539 = vst.msk [vmem:[#allocation5] sm:$0x3] %vm538_vm5, %v537_v45 }
 0x5ad   :  { %553 = vrot.lane.b32.xlu1 %v536_v44, %s854_s26 }
 0x61b   :  { %v548_v46 = vpop.permute.xlu0 %547  ;;  %v542_v47 = vpop.permute.xlu1 %541 }
 0x61c   :  { %v550_v48 = vsub.f32 %v1029_v11, %v548_v46  ;;  %v544_v49 = vsub.f32 %v1029_v11, %v542_v47 }
 0x61e   :  { %546 = vst.msk [vmem:[#allocation5] sm:$0x3] %vm545_vm6, %v544_v49 }
 0x61f   :  { %v554_v50 = vpop.permute.xlu1 %553  ;;  %552 = vst.msk [vmem:[#allocation5] sm:$0x3] %vm551_vm7, %v550_v48 }
 0x620   :  { %v556_v51 = vsub.f32 %v1029_v11, %v554_v50 }
 0x622   :  { %558 = vst.msk [vmem:[#allocation5] sm:$0x3] %vm557_vm8, %v556_v51 }
 0x623   :  { %827 = shalt.err (!%p824_p6)
}
 0x624   :  { %s828_s17 = scalar_lea.hbm %s1086_s9, 32 }
 0x625   :  { %p829_p7 = scmp.ne.s32.totalorder %s1086_s9, %s828_s17  ;;  %p832_p8 = scmp.lt.u32.totalorder %s828_s17, %s1086_s9 }
 0x627   :  { %p834_p9 = pnand %p832_p8, %p829_p7 }
 0x629   :  { %837 = shalt.err (!%p834_p9)
}
 0x62a   :  { %568 = dma.vmem_to_hbm [thread:$0]  %s566_s15, 32, %s1086_s9, [#allocation4]  }
 0x62b   :  { %840 = dma.done.wait [#allocation4], 32  }
 0x62c   :  { %841 = vsyncadd [#allocation4], 4294967264 }
 0x62d   :  { %842 = dma.done.wait [#allocation7], 32  }
 0x62e   :  { %843 = vsyncadd [#allocation7], 4294967264 }
 0x62f   :  { %585 = vsyncpa [#allocation3], 1 }
 0x630   :  { %586 = vsyncpa [#allocation4], 1 }
 0x631   :  { %587 = vsyncpa [#allocation7], 1 }

// kernel: tpu_custom_call.1
= control target key start
LH: loop header
LB: loop body
LE: loop exit
PB: predicated region body
PF: predicated region fallthrough
CT: control target
= control target key end

     0   :  { %16 = vsyncpa [#allocation3], 0  ;;  %s1077_s0 = inlined_call_operand.vmem [shape: f32[2,32], index: 0, kind: input, shape index: {}]   ;;  %s1078_s1 = inlined_call_operand.vmem [shape: bf16[32,128], index: 1, kind: input, shape index: {}]   ;;  %s1079_s2 = inlined_call_operand.vmem [shape: f32[1,128], index: 2, kind: input, shape index: {}]   ;;  %s1080_s3 = inlined_call_operand.vmem [shape: bf16[128,128], index: 3, kind: input, shape index: {}]   ;;  %s1081_s4 = inlined_call_operand.vmem [shape: f32[1,128], index: 4, kind: input, shape index: {}]   ;;  %s1082_s5 = inlined_call_operand.hbm [shape: bf16[128,128], index: 5, kind: input, shape index: {}]   ;;  %s1083_s6 = inlined_call_operand.vmem [shape: f32[1,128], index: 6, kind: input, shape index: {}]   ;;  %s1084_s7 = inlined_call_operand.vmem [shape: bf16[128,32], index: 7, kind: input, shape index: {}]   ;;  %s1085_s8 = inlined_call_operand.vmem [shape: f32[1,32], index: 8, kind: input, shape index: {}]   ;;  %s1086_s9 = inlined_call_operand.hbm [shape: f32[2,32], index: 9, kind: output, shape index: {0}]   ;;  %s1087_s10 = inlined_call_operand.hbm [shape: f32[2,128], index: 10, kind: output, shape index: {1}]  }
   0x1   :  { %17 = vsyncpa [#allocation4], 0 }
   0x2   :  { %18 = vsyncpa [#allocation7], 0  ;;  %s844_s13 = smov [#allocation2]   ;;  %s772_s17 = scalar_lea.hbm %s1082_s5, 1024 }
   0x3   :  { %s34_s14 = sshll.u32 %s844_s13, 4  ;;  %p773_p0 = scmp.ne.s32.totalorder %s1082_s5, %s772_s17  ;;  %s35_s14 = int_to_ptr.vmem [resolvable:$true] %s34_s14 }
   0x4   :  { %p776_p1 = scmp.lt.u32.totalorder %s772_s17, %s1082_s5 }
   0x6   :  { %p778_p2 = pnand %p776_p1, %p773_p0 }
   0x8   :  { %781 = shalt.err (!%p778_p2)
}
   0x9   :  { %s782_s22 = scalar_lea.vmem %s35_s14, 1024  ;;  %p787_p4 = scmp.lt.s32.totalorder %s35_s14, %s35_s14 }
   0xa   :  { %p783_p3 = scmp.ne.s32.totalorder %s35_s14, %s782_s22  ;;  %p788_p5 = scmp.lt.s32.totalorder %s782_s22, %s782_s22 }
   0xc   :  { %p789_p6 = por %p788_p5, %p787_p4 }
   0xe   :  { %p790_p7 = pnand %p789_p6, %p783_p3 }
  0x10   :  { %793 = shalt.err (!%p790_p7)
}
  0x11   :  { %s845_s23 = smov 64   ;;  %s846_s24 = smov 4  }
  0x12   :  { %40 = dma.hbm_to_vmem [thread:$0]  %s1082_s5, 1024, %s35_s14, [#allocation3], %s845_s23, %s845_s23, %s846_s24  }
  0x13   :  { %838 = dma.done.wait [#allocation3], 1024  }
  0x14   :  { %839 = vsyncadd [#allocation3], 4294966272  ;;  %v847_v0 = vmov 0.0   ;;  %vm848_vm0 = vmmov 0   ;;  %v730_v1 = vld [vmem:[%s1078_s1] sm:$0xff]   ;;  %v731_v2 = vld [vmem:[%s1078_s1 + $0x8] sm:$0xff]   ;;  %v233_v25 = vlaneseq }
  0x15   :  { %649 = vmatprep.subr.bf16.mxu0 %v847_v0  ;;  %653 = vmatprep.mubr.msk.bf16.mxu0 %vm848_vm0, %v847_v0  ;;  %v51_v3 = vld [vmem:[%s1077_s0] sm:$0x3]  ;;  %v733_v6 = vld [vmem:[%s1080_s3 + $0x8] sm:$0xff]   ;;  %vm76_vm1 = vcmask 261120   ;;  %v734_v7 = vld [vmem:[%s1080_s3 + $0x10] sm:$0xff]   ;;  %vm239_vm3 = vcmask 1041408  }
  0x16   :  { %657 = vmatprep.subr.bf16.mxu1 %v847_v0  ;;  %673 = vmatprep.mubr.msk.bf16.mxu1 %vm848_vm0, %v847_v0  ;;  %v732_v4 = vld [vmem:[%s1080_s3] sm:$0xff]   ;;  %v52_v5 = vpack.c.bf16 %v51_v3, %v51_v3  ;;  %v735_v8 = vld [vmem:[%s1080_s3 + $0x18] sm:$0xff]   ;;  %v737_v10 = vld [vmem:[%s1080_s3 + $0x28] sm:$0xff]   ;;  %v234_v27 = vand.u32 127, %v233_v25  ;;  %s851_s24 = smov 104   ;;  %s853_s25 = smov 16  }
  0x17   :  { %650 = vmatpush3.bf16.msra.mxu0 %v730_v1  ;;  %658 = vmatpush3.bf16.msra.mxu1 %v732_v4  ;;  %v736_v9 = vld [vmem:[%s1080_s3 + $0x20] sm:$0xff]   ;;  %v738_v11 = vld [vmem:[%s1080_s3 + $0x30] sm:$0xff]   ;;  %v739_v12 = vld [vmem:[%s1080_s3 + $0x38] sm:$0xff]   ;;  %s854_s26 = smov 24   ;;  %s855_s27 = smov [#allocation6]  }
  0x18   :  { %651 = vmatprep.subr.bf16.mxu0 %v847_v0  ;;  %659 = vmatprep.subr.bf16.mxu1 %v847_v0  ;;  %v588_v13 = vld [vmem:[%s1079_s2] ss:$0 sm:$0xff]  ;;  %v741_v22 = vld [vmem:[#allocation2 + $0x8] sm:$0xff]   ;;  %v742_v23 = vld [vmem:[#allocation2 + $0x10] sm:$0xff]   ;;  %vm235_vm2 = vcmp.lt.s32.totalorder %v234_v27, 2  ;;  %vm236_vm4 = vcmp.eq.s32.totalorder %v234_v27, 2 }
  0x19   :  { %v740_v21 = vld [vmem:[#allocation2] sm:$0xff]   ;;  %v743_v24 = vld [vmem:[#allocation2 + $0x18] sm:$0xff]   ;;  %v745_v37 = vld [vmem:[#allocation2 + $0x28] sm:$0xff]   ;;  %s575_s2 = sshll.u32 %s855_s27, 4  ;;  %s576_s2 = int_to_ptr.vmem [resolvable:$true] %s575_s2 }
  0x1a   :  { %v592_v26 = vld [vmem:[%s1081_s4] ss:$0 sm:$0xff]  ;;  %v746_v38 = vld [vmem:[#allocation2 + $0x30] sm:$0xff]   ;;  %v747_v39 = vld [vmem:[#allocation2 + $0x38] sm:$0xff]   ;;  %s794_s3 = scalar_lea.vmem %s576_s2, 32  ;;  %p799_p9 = scmp.lt.s32.totalorder %s576_s2, %s576_s2 }
  0x1b   :  { %652 = vmatpush3.bf16.msra.mxu0 %v731_v2  ;;  %660 = vmatpush3.bf16.msra.mxu1 %v733_v6  ;;  %v744_v36 = vld [vmem:[#allocation2 + $0x20] sm:$0xff]   ;;  %v749_v41 = vld [vmem:[%s1084_s7 + $0x8] sm:$0xff]   ;;  %v750_v42 = vld [vmem:[%s1084_s7 + $0x10] sm:$0xff]   ;;  %p795_p8 = scmp.ne.s32.totalorder %s576_s2, %s794_s3  ;;  %p800_p10 = scmp.lt.s32.totalorder %s794_s3, %s794_s3 }
  0x1c   :  { %677 = vmatprep.subr.bf16.mxu0 %v847_v0  ;;  %661 = vmatprep.subr.bf16.mxu1 %v847_v0  ;;  %v748_v40 = vld [vmem:[%s1084_s7] sm:$0xff]   ;;  %v751_v43 = vld [vmem:[%s1084_s7 + $0x18] sm:$0xff]   ;;  %v753_v45 = vld [vmem:[%s1084_s7 + $0x28] sm:$0xff]  }
  0x1d   :  { %v752_v44 = vld [vmem:[%s1084_s7 + $0x20] sm:$0xff]   ;;  %v754_v63 = vld [vmem:[%s1084_s7 + $0x30] sm:$0xff]   ;;  %v755_v1 = vld [vmem:[%s1084_s7 + $0x38] sm:$0xff]   ;;  %s849_s7 = smov 112   ;;  %p801_p11 = por %p800_p10, %p799_p9 }
  0x1e   :  { %654 = vmatmul.mubr.msk.bf16.vlgmr.msra.gmra.mrb[0].mxu0 %vm76_vm1, %v52_v5  ;;  %v601_v2 = vld [vmem:[%s1083_s6] ss:$0 sm:$0xff]  ;;  %s850_s6 = smov 120  }
  0x1f   :  { %693 = vmatprep.mubr.msk.bf16.mxu0 %vm848_vm0, %v847_v0  ;;  %662 = vmatpush3.bf16.msra.mxu1 %v734_v7  ;;  %p802_p12 = pnand %p801_p11, %p795_p8 }
  0x20   :  { %663 = vmatprep.subr.bf16.mxu1 %v847_v0  ;;  %678 = vmatpush3.bf16.msra.mxu0 %v740_v21 }
  0x21   :  { %679 = vmatprep.subr.bf16.mxu0 %v847_v0 }
  0x23   :  { %664 = vmatpush3.bf16.msra.mxu1 %v735_v8 }
  0x24   :  { %665 = vmatprep.subr.bf16.mxu1 %v847_v0  ;;  %680 = vmatpush3.bf16.msra.mxu0 %v741_v22 }
  0x25   :  { %681 = vmatprep.subr.bf16.mxu0 %v847_v0 }
  0x27   :  { %666 = vmatpush3.bf16.msra.mxu1 %v736_v9 }
  0x28   :  { %667 = vmatprep.subr.bf16.mxu1 %v847_v0  ;;  %682 = vmatpush3.bf16.msra.mxu0 %v742_v23 }
  0x29   :  { %683 = vmatprep.subr.bf16.mxu0 %v847_v0 }
  0x2b   :  { %668 = vmatpush3.bf16.msra.mxu1 %v737_v10 }
  0x2c   :  { %669 = vmatprep.subr.bf16.mxu1 %v847_v0  ;;  %684 = vmatpush3.bf16.msra.mxu0 %v743_v24 }
  0x2d   :  { %685 = vmatprep.subr.bf16.mxu0 %v847_v0 }
  0x2f   :  { %670 = vmatpush3.bf16.msra.mxu1 %v738_v11 }
  0x30   :  { %671 = vmatprep.subr.bf16.mxu1 %v847_v0  ;;  %686 = vmatpush3.bf16.msra.mxu0 %v744_v36 }
  0x31   :  { %687 = vmatprep.subr.bf16.mxu0 %v847_v0 }
  0x33   :  { %672 = vmatpush3.bf16.msra.mxu1 %v739_v12 }
  0x34   :  { %697 = vmatprep.subr.bf16.mxu1 %v847_v0  ;;  %688 = vmatpush3.bf16.msra.mxu0 %v745_v37 }
  0x35   :  { %689 = vmatprep.subr.bf16.mxu0 %v847_v0 }
  0x38   :  { %690 = vmatpush3.bf16.msra.mxu0 %v746_v38 }
  0x39   :  { %691 = vmatprep.subr.bf16.mxu0 %v847_v0 }
  0x3c   :  { %692 = vmatpush3.bf16.msra.mxu0 %v747_v39 }
  0xf1   :  { %v114_v14 = vpop.f32.mrb[0].mxu0 }
  0xf2   :  { %v115_v15 = vadd.f32 %v588_v13, %v114_v14  ;;  %v655_v16 = vpop.f32.mrb[1].mxu0 }
  0xf3   :  { %v117_v17 = vpop.f32.mrb[2].mxu0 }
  0xf4   :  { %v120_v18 = vmax.f32 %v115_v15, 0.0  ;;  %v656_v19 = vpop.f32.mrb[3].mxu0 }
  0xf6   :  { %v121_v20 = vpack.c.bf16 %v120_v18, %v120_v18 }
  0xf8   :  { %674 = vmatmul.mubr.bf16.vlgmr.msra.gmra.mrb[0].mxu1 %v121_v20 }
  0xf9   :  { %713 = vmatprep.mubr.msk.bf16.mxu1 %vm848_vm0, %v847_v0  ;;  %698 = vmatpush3.bf16.msra.mxu1 %v748_v40 }
  0xfa   :  { %699 = vmatprep.subr.bf16.mxu1 %v847_v0 }
  0xfd   :  { %700 = vmatpush3.bf16.msra.mxu1 %v749_v41 }
  0xfe   :  { %701 = vmatprep.subr.bf16.mxu1 %v847_v0 }
 0x101   :  { %702 = vmatpush3.bf16.msra.mxu1 %v750_v42 }
 0x102   :  { %703 = vmatprep.subr.bf16.mxu1 %v847_v0 }
 0x105   :  { %704 = vmatpush3.bf16.msra.mxu1 %v751_v43 }
 0x106   :  { %705 = vmatprep.subr.bf16.mxu1 %v847_v0 }
 0x109   :  { %706 = vmatpush3.bf16.msra.mxu1 %v752_v44 }
 0x10a   :  { %707 = vmatprep.subr.bf16.mxu1 %v847_v0 }
 0x10d   :  { %708 = vmatpush3.bf16.msra.mxu1 %v753_v45 }
 0x10e   :  { %709 = vmatprep.subr.bf16.mxu1 %v847_v0 }
 0x111   :  { %710 = vmatpush3.bf16.msra.mxu1 %v754_v63 }
 0x112   :  { %711 = vmatprep.subr.bf16.mxu1 %v847_v0  ;;  %v610_v0 = vld [vmem:[%s1085_s8] ss:$0 sm:$0xff]  ;;  %s852_s8 = smov 8  }
 0x115   :  { %712 = vmatpush3.bf16.msra.mxu1 %v755_v1 }
 0x1cb   :  { %v227_v28 = vpop.f32.mrb[0].mxu1 }
 0x1cc   :  { %v228_v29 = vadd.f32 %v592_v26, %v227_v28  ;;  %v675_v30 = vpop.f32.mrb[1].mxu1 }
 0x1cd   :  { %v230_v31 = vpop.f32.mrb[2].mxu1 }
 0x1ce   :  { %v676_v32 = vpop.f32.mrb[3].mxu1  ;;  %v237_v33 = vmul.f32 %v228_v29, %v228_v29  ;;  %v247_v46 = vand.u32 2147483647, %v228_v29  ;;  %v246_v55 = vmax.f32 %v228_v29, 0.0 }
 0x1d0   :  { %v238_v34 = vsel %vm235_vm2, %v237_v33, 0.0  ;;  %v248_v47 = vsub.f32 0.0, %v247_v46 }
 0x1d1   :  { %v240_v35 = vsel %vm239_vm3, %v238_v34, 0.0 }
 0x1d2   :  { %241 = vadd.xlane.f32.xlu0 %v240_v35  ;;  %v249_v48 = vmul.f32 1.442695, %v248_v47 }
 0x1d4   :  { %756 = vpow2.f32 %v249_v48 }
 0x1de   :  { %v757_v49 = vpop.eup %756 }
 0x1df   :  { %v251_v50 = vadd.f32 1.0, %v757_v49 }
 0x1e1   :  { %758 = vlog2.f32 %v251_v50 }
 0x1eb   :  { %v759_v51 = vpop.eup %758 }
 0x1ec   :  { %v253_v54 = vmul.f32 0.6931472, %v759_v51 }
 0x1ee   :  { %v254_v56 = vadd.f32 %v253_v54, %v246_v55 }
 0x1f0   :  { %v255_v57 = vadd.f32 1.0, %v254_v56 }
 0x1f2   :  { %v256_v60 = vsel %vm236_vm4, %v255_v57, 0.0 }
 0x25f   :  { %v242_v52 = vpop.xlane.xlu0 %241 }
 0x260   :  { %v243_v53 = vadd.f32 1e-12, %v242_v52 }
 0x262   :  { %760 = vrsqrt.f32 %v243_v53 }
 0x26c   :  { %v761_v58 = vpop.eup %760 }
 0x26d   :  { %v245_v59 = vmul.f32 %v761_v58, %v228_v29 }
 0x26f   :  { %v257_v61 = vsel %vm235_vm2, %v245_v59, %v256_v60 }
 0x270   :  { %v259_v62 = vpack.c.bf16 %v257_v61, %v257_v61  ;;  %258 = vst [vmem:[#allocation6] sm:$0x3] %v257_v61 }
 0x272   :  { %694 = vmatmul.mubr.bf16.vlgmr.msra.gmra.mrb[4].mxu0 %v259_v62 }
 0x345   :  { %v365_v3 = vpop.f32.mrb[4].mxu0 }
 0x346   :  { %v366_v4 = vadd.f32 %v601_v2, %v365_v3  ;;  %v695_v5 = vpop.f32.mrb[5].mxu0 }
 0x347   :  { %v368_v6 = vpop.f32.mrb[6].mxu0 }
 0x348   :  { %v371_v7 = vmax.f32 %v366_v4, 0.0  ;;  %v696_v8 = vpop.f32.mrb[7].mxu0 }
 0x34a   :  { %v372_v9 = vpack.c.bf16 %v371_v7, %v371_v7 }
 0x34c   :  { %714 = vmatmul.mubr.bf16.vlgmr.msra.gmra.mrb[4].mxu1 %v372_v9 }
 0x41f   :  { %v478_v10 = vpop.f32.mrb[4].mxu1 }
 0x420   :  { %v1029_v11 = vadd.f32 %v610_v0, %v478_v10  ;;  %v715_v12 = vpop.f32.mrb[5].mxu1 }
 0x421   :  { %v481_v13 = vpop.f32.mrb[6].mxu1 }
 0x422   :  { %489 = vrot.lane.b32.xlu1 %v1029_v11, %s849_s7  ;;  %485 = vrot.lane.b32.xlu0 %v1029_v11, %s850_s6  ;;  %v716_v14 = vpop.f32.mrb[7].mxu1 }
 0x426   :  { %493 = vrot.lane.b32.xlu1 %v1029_v11, %s851_s24 }
 0x494   :  { %v490_v15 = vpop.permute.xlu1 %489  ;;  %v486_v16 = vpop.permute.xlu0 %485 }
 0x495   :  { %v488_v17 = vmax.f32 %v1029_v11, %v486_v16 }
 0x497   :  { %v492_v18 = vmax.f32 %v488_v17, %v490_v15 }
 0x498   :  { %v494_v19 = vpop.permute.xlu1 %493 }
 0x499   :  { %v496_v20 = vmax.f32 %v492_v18, %v494_v19 }
 0x49b   :  { %501 = vrot.lane.b32.xlu1 %v496_v20, %s852_s8  ;;  %v497_v33 = vsub.f32 %v1029_v11, %v496_v20 }
 0x49d   :  { %v498_v34 = vmul.f32 1.442695, %v497_v33 }
 0x49f   :  { %512 = vrot.lane.b32.xlu1 %v496_v20, %s853_s25 }
 0x4a3   :  { %523 = vrot.lane.b32.xlu1 %v496_v20, %s854_s26 }
 0x50d   :  { %v502_v21 = vpop.permute.xlu1 %501 }
 0x50e   :  { %v504_v22 = vsub.f32 %v1029_v11, %v502_v21 }
 0x510   :  { %v505_v23 = vmul.f32 1.442695, %v504_v22 }
 0x511   :  { %v513_v24 = vpop.permute.xlu1 %512 }
 0x512   :  { %762 = vpow2.f32 %v505_v23  ;;  %v515_v25 = vsub.f32 %v1029_v11, %v513_v24 }
 0x514   :  { %v516_v26 = vmul.f32 1.442695, %v515_v25 }
 0x515   :  { %v524_v27 = vpop.permute.xlu1 %523 }
 0x516   :  { %764 = vpow2.f32 %v516_v26  ;;  %v526_v28 = vsub.f32 %v1029_v11, %v524_v27 }
 0x518   :  { %v527_v29 = vmul.f32 1.442695, %v526_v28 }
 0x51a   :  { %766 = vpow2.f32 %v527_v29 }
 0x51b   :  { %768 = vpow2.f32 %v498_v34 }
 0x51c   :  { %v763_v30 = vpop.eup %762 }
 0x51d   :  { %508 = vrot.lane.b32.xlu1 %v763_v30, %s850_s6 }
 0x520   :  { %v765_v31 = vpop.eup %764 }
 0x521   :  { %519 = vrot.lane.b32.xlu1 %v765_v31, %s849_s7 }
 0x524   :  { %v767_v32 = vpop.eup %766 }
 0x525   :  { %530 = vrot.lane.b32.xlu0 %v767_v32, %s851_s24  ;;  %v769_v36 = vpop.eup %768 }
 0x58f   :  { %v509_v35 = vpop.permute.xlu1 %508 }
 0x590   :  { %v511_v38 = vadd.f32 %v769_v36, %v509_v35 }
 0x593   :  { %v520_v37 = vpop.permute.xlu1 %519 }
 0x594   :  { %v522_v39 = vadd.f32 %v520_v37, %v511_v38 }
 0x597   :  { %v531_v40 = vpop.permute.xlu0 %530 }
 0x598   :  { %v533_v41 = vadd.f32 %v531_v40, %v522_v39 }
 0x59a   :  { %770 = vlog2.f32 %v533_v41 }
 0x59b   :  { %805 = shalt.err (!%p802_p12)
}
 0x59c   :  { %s806_s29 = scalar_lea.hbm %s1087_s10, 32 }
 0x59d   :  { %p807_p13 = scmp.ne.s32.totalorder %s1087_s10, %s806_s29  ;;  %p810_p0 = scmp.lt.u32.totalorder %s806_s29, %s1087_s10 }
 0x59f   :  { %p812_p1 = pnand %p810_p0, %p807_p13 }
 0x5a1   :  { %815 = shalt.err (!%p812_p1)
}
 0x5a2   :  { %578 = dma.vmem_to_hbm [thread:$0]  %s576_s2, 32, %s1087_s10, [#allocation7]   ;;  %vm538_vm5 = vcmask 58368   ;;  %vm545_vm6 = vcmask 123968   ;;  %vm551_vm7 = vcmask 189568   ;;  %vm557_vm8 = vcmask 255168  }
 0x5a3   :  { %s856_s10 = smov [#allocation5]  }
 0x5a4   :  { %v771_v42 = vpop.eup %770  ;;  %s565_s15 = sshll.u32 %s856_s10, 4  ;;  %s566_s15 = int_to_ptr.vmem [resolvable:$true] %s565_s15 }
 0x5a5   :  { %v535_v43 = vmul.f32 0.6931472, %v771_v42  ;;  %s816_s1 = scalar_lea.vmem %s566_s15, 32  ;;  %p821_p3 = scmp.lt.s32.totalorder %s566_s15, %s566_s15 }
 0x5a6   :  { %p817_p2 = scmp.ne.s32.totalorder %s566_s15, %s816_s1  ;;  %p822_p4 = scmp.lt.s32.totalorder %s816_s1, %s816_s1 }
 0x5a7   :  { %v536_v44 = vadd.f32 %v535_v43, %v496_v20 }
 0x5a8   :  { %p823_p5 = por %p822_p4, %p821_p3 }
 0x5a9   :  { %v537_v45 = vsub.f32 %v1029_v11, %v536_v44  ;;  %547 = vrot.lane.b32.xlu0 %v536_v44, %s853_s25  ;;  %541 = vrot.lane.b32.xlu1 %v536_v44, %s852_s8 }
 0x5aa   :  { %p824_p6 = pnand %p823_p5, %p817_p2 }
 0x5ab   :  { %539 = vst.msk [vmem:[#allocation5] sm:$0x3] %vm538_vm5, %v537_v45 }
 0x5ad   :  { %553 = vrot.lane.b32.xlu1 %v536_v44, %s854_s26 }
 0x61b   :  { %v548_v46 = vpop.permute.xlu0 %547  ;;  %v542_v47 = vpop.permute.xlu1 %541 }
 0x61c   :  { %v550_v48 = vsub.f32 %v1029_v11, %v548_v46  ;;  %v544_v49 = vsub.f32 %v1029_v11, %v542_v47 }
 0x61e   :  { %546 = vst.msk [vmem:[#allocation5] sm:$0x3] %vm545_vm6, %v544_v49 }
 0x61f   :  { %v554_v50 = vpop.permute.xlu1 %553  ;;  %552 = vst.msk [vmem:[#allocation5] sm:$0x3] %vm551_vm7, %v550_v48 }
 0x620   :  { %v556_v51 = vsub.f32 %v1029_v11, %v554_v50 }
 0x622   :  { %558 = vst.msk [vmem:[#allocation5] sm:$0x3] %vm557_vm8, %v556_v51 }
 0x623   :  { %827 = shalt.err (!%p824_p6)
}
 0x624   :  { %s828_s17 = scalar_lea.hbm %s1086_s9, 32 }
 0x625   :  { %p829_p7 = scmp.ne.s32.totalorder %s1086_s9, %s828_s17  ;;  %p832_p8 = scmp.lt.u32.totalorder %s828_s17, %s1086_s9 }
 0x627   :  { %p834_p9 = pnand %p832_p8, %p829_p7 }
 0x629   :  { %837 = shalt.err (!%p834_p9)
}
 0x62a   :  { %568 = dma.vmem_to_hbm [thread:$0]  %s566_s15, 32, %s1086_s9, [#allocation4]  }
 0x62b   :  { %840 = dma.done.wait [#allocation4], 32  }
 0x62c   :  { %841 = vsyncadd [#allocation4], 4294967264 }
 0x62d   :  { %842 = dma.done.wait [#allocation7], 32  }
 0x62e   :  { %843 = vsyncadd [#allocation7], 4294967264 }
 0x62f   :  { %585 = vsyncpa [#allocation3], 1 }
 0x630   :  { %586 = vsyncpa [#allocation4], 1 }
 0x631   :  { %587 = vsyncpa [#allocation7], 1 }

</bundles_post_ra>
